<compile_context>
chip_gen: v6e
topology: v6e:2x2x1
jax: 0.10.0
libtpu: 0.0.40
codegen_flags: <defaults>
</compile_context>

<pallas_src>
import math

import jax
import jax.numpy as jnp
from jax.experimental import pallas as pl
from jax.experimental.pallas import tpu as pltpu


_NEG_PAD = -1e30  # bias value for padded vocab columns (exp -> 0)


# --------------------------------------------------------------------------
# Kernels
# --------------------------------------------------------------------------
def _full_vocab_kernel(x_ref, w_ref, b_ref, o_ref):
    """One row-tile of log_softmax(x @ W + b, axis=-1), full vocab resident."""
    # MXU matmul in native dtype, f32 accumulation (no operand upcast).
    logits = jnp.dot(x_ref[...], w_ref[...], preferred_element_type=jnp.float32)
    logits = logits + b_ref[...]                       # bias is f32
    # Stable log-softmax, stored as logits - (max + log(sumexp)).
    m = jnp.max(logits, axis=-1, keepdims=True)
    sumexp = jnp.sum(jnp.exp(logits - m), axis=-1, keepdims=True)
    o_ref[...] = (logits - (m + jnp.log(sumexp))).astype(o_ref.dtype)


def _logits_lse_kernel(x_ref, w_ref, b_ref, logits_ref, lse_ref, m_sc, s_sc):
    """Vocab-tiled pass 1: store raw logits, accumulate online logsumexp."""
    j = pl.program_id(1)

    @pl.when(j == 0)
    def _init():
        m_sc[...] = jnp.full(m_sc.shape, -jnp.inf, dtype=jnp.float32)
        s_sc[...] = jnp.zeros(s_sc.shape, dtype=jnp.float32)

    logits = jnp.dot(x_ref[...], w_ref[...], preferred_element_type=jnp.float32)
    logits = logits + b_ref[...]
    logits_ref[...] = logits

    m_prev = m_sc[...]
    m_new = jnp.maximum(m_prev, jnp.max(logits, axis=-1, keepdims=True))
    s_sc[...] = (s_sc[...] * jnp.exp(m_prev - m_new)
                 + jnp.sum(jnp.exp(logits - m_new), axis=-1, keepdims=True))
    m_sc[...] = m_new

    @pl.when(j == pl.num_programs(1) - 1)
    def _finalize():
        lse_ref[...] = m_sc[...] + jnp.log(s_sc[...])


def _sub_lse_kernel(logits_ref, lse_ref, o_ref):
    """Vocab-tiled pass 2: log_probs = logits - lse (lane-dense store)."""
    o_ref[...] = (logits_ref[...] - lse_ref[...]).astype(o_ref.dtype)


# --------------------------------------------------------------------------
# Tile-size planning
# --------------------------------------------------------------------------
def _sublane_pack(itemsize):
    return 8 * max(1, 4 // max(1, itemsize))   # 8 f32, 16 bf16, 32 int8/fp8


def _pick_row_tile(rows, d_model, vocab, x_bytes, out_bytes, w_bytes,
                   vmem_budget):
    """Row tile for the weight-resident path, or None if it cannot fit."""
    pack = _sublane_pack(x_bytes)
    align = 256   # fills the 256-wide MXU (v6e/v7x); multiple of v5e's 128
    # Weight + bias are single-buffered (pl.Buffered(1)).
    fixed = d_model * vocab * w_bytes + vocab * 4
    per_row = (2 * d_model * x_bytes        # x tile (double-buffered)
               + 2 * vocab * out_bytes      # output tile (double-buffered)
               + 2 * vocab * 4)             # live f32 logits / exp temporaries
    if fixed + per_row * pack > vmem_budget:
        return None                          # -> vocab-tiled path
    tile = (vmem_budget - fixed) // per_row
    if tile >= align:
        tile = (tile // align) * align
    else:
        tile = (tile // pack) * pack
    # Keep >= ~4 grid steps on large inputs so the "parallel" axis really
    # shards across v7x's two TensorCores and the DMA pipeline has overlap.
    if rows >= 4 * align:
        tile = min(tile, max(align, (rows // (4 * align)) * align))
    tile = min(tile, 2048)
    rows_pad = max(pack, ((rows + pack - 1) // pack) * pack)
    tile = min(tile, rows_pad)
    return int(max(tile, pack))


def _pick_vocab_tiling(rows, d_model, vocab, x_bytes, w_bytes, out_bytes,
                       vmem_budget):
    """(row_tile, vocab_tile) for the vocab-tiled online-logsumexp path."""
    pack = _sublane_pack(x_bytes)
    vocab_pad = max(128, ((vocab + 127) // 128) * 128)
    rows_pad = max(pack, ((rows + pack - 1) // pack) * pack)
    for rt in (512, 256, 128, 64, 32, 16, 8):
        rt = max(pack, (min(rt, rows_pad) // pack) * pack)
        fixed = 2 * rt * d_model * x_bytes + 4 * rt * 4   # x (dbl) + lse/scratch
        per_col = (2 * d_model * w_bytes   # weight tile (double-buffered)
                   + 2 * 4                 # bias tile (double-buffered, f32)
                   + 2 * rt * 4            # logits tile (double-buffered, f32)
                   + rt * out_bytes)       # second-pass output tile (approx)
        avail = vmem_budget - fixed
        if avail <= 0:
            continue
        vt = (avail // per_col) // 128 * 128
        vt = min(vt, vocab_pad)
        if vt >= 128:
            return int(rt), int(vt)
    return int(pack), 128


# --------------------------------------------------------------------------
# pallas_call wrappers
# --------------------------------------------------------------------------
def _run_full_vocab(x2, w_t, b, out_dtype, row_tile, vmem_limit):
    rows, d_model = x2.shape
    vocab = w_t.shape[1]
    pad_r = (-rows) % row_tile
    if pad_r:
        x2 = jnp.pad(x2, ((0, pad_r), (0, 0)))
    pr = rows + pad_r

    out = pl.pallas_call(
        _full_vocab_kernel,
        out_shape=jax.ShapeDtypeStruct((pr, vocab), out_dtype),
        grid_spec=pltpu.PrefetchScalarGridSpec(
            num_scalar_prefetch=0,
            grid=(pr // row_tile,),
            in_specs=[
                pl.BlockSpec((row_tile, d_model), lambda i: (i, 0)),
                # Resident weight / bias: single-buffered (constant index map).
                pl.BlockSpec((d_model, vocab), lambda i: (0, 0),
                             pipeline_mode=pl.Buffered(1)),
                pl.BlockSpec((1, vocab), lambda i: (0, 0),
                             pipeline_mode=pl.Buffered(1)),
            ],
            out_specs=pl.BlockSpec((row_tile, vocab), lambda i: (i, 0)),
        ),
        compiler_params=pltpu.CompilerParams(
            dimension_semantics=("parallel",),
            vmem_limit_bytes=vmem_limit,
        ),
    )(x2, w_t, b)
    return out[:rows]


def _run_vocab_tiled(x2, w_t, b, out_dtype, row_tile, vocab_tile, vmem_limit):
    rows, d_model = x2.shape
    vocab = w_t.shape[1]
    pad_r = (-rows) % row_tile
    pad_v = (-vocab) % vocab_tile
    if pad_r:
        x2 = jnp.pad(x2, ((0, pad_r), (0, 0)))
    if pad_v:
        w_t = jnp.pad(w_t, ((0, 0), (0, pad_v)))
        b = jnp.pad(b, ((0, 0), (0, pad_v)), constant_values=_NEG_PAD)
    pr, pv = rows + pad_r, vocab + pad_v
    grid = (pr // row_tile, pv // vocab_tile)

    # Pass 1: raw logits (lane-dense) + per-row logsumexp via online update.
    logits, lse = pl.pallas_call(
        _logits_lse_kernel,
        out_shape=(jax.ShapeDtypeStruct((pr, pv), jnp.float32),
                   jax.ShapeDtypeStruct((pr, 1), jnp.float32)),
        grid_spec=pltpu.PrefetchScalarGridSpec(
            num_scalar_prefetch=0,
            grid=grid,
            in_specs=[
                pl.BlockSpec((row_tile, d_model), lambda i, j: (i, 0)),
                pl.BlockSpec((d_model, vocab_tile), lambda i, j: (0, j)),
                pl.BlockSpec((1, vocab_tile), lambda i, j: (0, j)),
            ],
            out_specs=[
                pl.BlockSpec((row_tile, vocab_tile), lambda i, j: (i, j)),
                pl.BlockSpec((row_tile, 1), lambda i, j: (i, 0)),
            ],
            scratch_shapes=[pltpu.VMEM((row_tile, 1), jnp.float32),
                            pltpu.VMEM((row_tile, 1), jnp.float32)],
        ),
        compiler_params=pltpu.CompilerParams(
            dimension_semantics=("parallel", "arbitrary"),
            vmem_limit_bytes=vmem_limit,
        ),
    )(x2, w_t, b)

    # Pass 2: subtract lse; alias the logits buffer in place when dtypes match.
    aliases = {0: 0} if jnp.dtype(out_dtype) == jnp.dtype(jnp.float32) else {}
    out = pl.pallas_call(
        _sub_lse_kernel,
        out_shape=jax.ShapeDtypeStruct((pr, pv), out_dtype),
        grid_spec=pltpu.PrefetchScalarGridSpec(
            num_scalar_prefetch=0,
            grid=grid,
            in_specs=[
                pl.BlockSpec((row_tile, vocab_tile), lambda i, j: (i, j)),
                pl.BlockSpec((row_tile, 1), lambda i, j: (i, 0)),
            ],
            out_specs=pl.BlockSpec((row_tile, vocab_tile), lambda i, j: (i, j)),
        ),
        compiler_params=pltpu.CompilerParams(
            dimension_semantics=("parallel", "parallel"),
            vmem_limit_bytes=vmem_limit,
        ),
        input_output_aliases=aliases,
    )(logits, lse)
    return out[:rows, :vocab]


# --------------------------------------------------------------------------
# Public API
# --------------------------------------------------------------------------
def prepare_generator_params(weight, bias, param_dtype=None):
    """One-time prep (hoists the per-forward HBM transpose/cast).

    weight: (vocab, d_model) torch nn.Linear layout; bias: (vocab,).
    Returns (w_t, b) with w_t: (d_model, vocab) in param_dtype, b: (1, vocab) f32.
    """
    if param_dtype is None:
        param_dtype = weight.dtype
    w_t = jnp.asarray(weight, dtype=param_dtype).T
    b = jnp.asarray(bias, dtype=jnp.float32).reshape(1, -1)
    return w_t, b


def generator_forward(x, w_t, b, *, row_tile=None, vocab_tile=None,
                      force_vocab_tiled=False, out_dtype=None):
    """log_softmax(x @ w_t + b, axis=-1).

    x: (..., d_model); w_t: (d_model, vocab) pre-transposed weight (see
    prepare_generator_params); b: (1, vocab) or (vocab,) bias.
    Output dtype defaults to x.dtype (torch log_softmax semantics).
    """
    lead, d_model = x.shape[:-1], x.shape[-1]
    if w_t.shape[0] != d_model:
        raise ValueError("w_t must be (d_model, vocab); call "
                         "prepare_generator_params on the torch-layout weight")
    vocab = w_t.shape[1]
    rows = int(math.prod(lead))
    if out_dtype is None:
        out_dtype = x.dtype

    x2 = x.reshape(rows, d_model)
    b2 = jnp.asarray(b, dtype=jnp.float32).reshape(1, vocab)

    try:
        vmem_cap = int(pltpu.get_tpu_info().vmem_capacity_bytes)
    except Exception:
        vmem_cap = 64 * 1024 * 1024          # conservative (v7x per-TC)
    vmem_limit = vmem_cap * 3 // 4           # scoped limit handed to Mosaic
    vmem_budget = vmem_limit * 4 // 5        # planner headroom for temps

    x_bytes = x2.dtype.itemsize
    w_bytes = w_t.dtype.itemsize
    o_bytes = jnp.dtype(out_dtype).itemsize

    rt = row_tile
    use_tiled = force_vocab_tiled or vocab_tile is not None
    if not use_tiled:
        if rt is None:
            rt = _pick_row_tile(rows, d_model, vocab, x_bytes, o_bytes,
                                w_bytes, vmem_budget)
        use_tiled = rt is None

    if not use_tiled:
        out2 = _run_full_vocab(x2, w_t, b2, out_dtype, rt, vmem_limit)
    else:
        auto_rt, auto_vt = _pick_vocab_tiling(rows, d_model, vocab, x_bytes,
                                              w_bytes, o_bytes, vmem_budget)
        rt = row_tile if row_tile is not None else auto_rt
        vt = vocab_tile if vocab_tile is not None else auto_vt
        out2 = _run_vocab_tiled(x2, w_t, b2, out_dtype, rt, vt, vmem_limit)

    return out2.reshape(lead + (vocab,))


# --------------------------------------------------------------------------
# Self-test
# --------------------------------------------------------------------------
if __name__ == "__main__":
    key = jax.random.PRNGKey(0)
    batch, seq, d_model, vocab = 2, 8, 32, 64

    kx, kw, kb = jax.random.split(key, 3)
    x = jax.random.normal(kx, (batch, seq, d_model), dtype=jnp.float32)
    weight = jax.random.normal(kw, (vocab, d_model), dtype=jnp.float32) * (
        1.0 / math.sqrt(d_model))
    bias = jax.random.normal(kb, (vocab,), dtype=jnp.float32) * 0.1

    # One-time parameter prep (weight transpose hoisted out of the forward).
    w_t, b2 = prepare_generator_params(weight, bias)

    # Path 1: weight-resident full-vocab kernel (auto-selected).
    out = generator_forward(x, w_t, b2)
    out = jax.block_until_ready(out)

    ref = jax.nn.log_softmax(jnp.einsum("bsd,vd->bsv", x, weight) + bias, -1)
    assert out.shape == (batch, seq, vocab)
    # Tolerance covers the MXU's default (bf16-operand, f32-accumulate) matmul
    # precision vs the XLA reference; structural bugs would be >> 1e-2.
    assert jnp.allclose(out, ref, atol=1e-2, rtol=1e-2), "full-vocab mismatch"

    # Path 2: vocab-tiled online-logsumexp kernels, forced at small shapes so
    # the multi-step (row, vocab) grid and the fix-up pass are exercised.
    vocab2 = 256
    kw2, kb2 = jax.random.split(kw)
    weight2 = jax.random.normal(kw2, (vocab2, d_model), dtype=jnp.float32) * (
        1.0 / math.sqrt(d_model))
    bias2 = jax.random.normal(kb2, (vocab2,), dtype=jnp.float32) * 0.1
    w2_t, b2_2 = prepare_generator_params(weight2, bias2)

    out2 = generator_forward(x, w2_t, b2_2, force_vocab_tiled=True,
                             row_tile=8, vocab_tile=128)
    out2 = jax.block_until_ready(out2)

    ref2 = jax.nn.log_softmax(jnp.einsum("bsd,vd->bsv", x, weight2) + bias2, -1)
    assert out2.shape == (batch, seq, vocab2)
    assert jnp.allclose(out2, ref2, atol=1e-2, rtol=1e-2), "vocab-tiled mismatch"

    print("KERNEL_OK")
</pallas_src>

<mosaic_0001>
module attributes {stable_mosaic.version = 11 : i64} {
  func.func @_full_vocab_kernel(%arg0: i32, %arg1: memref<16x32xf32, #tpu.memory_space<vmem>>, %arg2: memref<32x64xf32, #tpu.memory_space<vmem>>, %arg3: memref<1x64xf32, #tpu.memory_space<vmem>>, %arg4: memref<16x64xf32, #tpu.memory_space<vmem>>) attributes {dimension_semantics = [#tpu.dimension_semantics<parallel>], iteration_bounds = array<i64: 1>, scalar_prefetch = 0 : i64, scratch_operands = 0 : i64, tpu.core_type = #tpu.core_type<tc>, window_params = [{transform_indices = @transform_0, window_bounds = array<i64: 16, 32>}, {pipeline_mode = #tpu.pipeline_mode<synchronous>, transform_indices = @transform_1, window_bounds = array<i64: 32, 64>}, {pipeline_mode = #tpu.pipeline_mode<synchronous>, transform_indices = @transform_2, window_bounds = array<i64: 1, 64>}, {transform_indices = @transform_3, window_bounds = array<i64: 16, 64>}]} {
    %c0 = arith.constant 0 : index
    %c0_0 = arith.constant 0 : index
    %0 = vector.load %arg1[%c0, %c0_0] : memref<16x32xf32, #tpu.memory_space<vmem>>, vector<16x32xf32>
    %c0_1 = arith.constant 0 : index
    %c0_2 = arith.constant 0 : index
    %1 = vector.load %arg2[%c0_1, %c0_2] : memref<32x64xf32, #tpu.memory_space<vmem>>, vector<32x64xf32>
    %cst = arith.constant dense<0.000000e+00> : vector<16x64xf32>
    %2 = tpu.matmul %0, %1, %cst {dimension_numbers = #tpu.dot_dimension_numbers<[1], [0], [0], [1], [0, 0, 1, 1], [], []>} : vector<16x32xf32>, vector<32x64xf32>, vector<16x64xf32> -> vector<16x64xf32>
    %c0_3 = arith.constant 0 : index
    %c0_4 = arith.constant 0 : index
    %3 = vector.load %arg3[%c0_3, %c0_4] : memref<1x64xf32, #tpu.memory_space<vmem>>, vector<1x64xf32>
    %4 = vector.broadcast %3 : vector<1x64xf32> to vector<16x64xf32>
    %5 = arith.addf %2, %4 : vector<16x64xf32>
    %cst_5 = arith.constant dense<0xFF800000> : vector<16xf32>
    %6 = vector.multi_reduction <maximumf>, %5, %cst_5 [1] : vector<16x64xf32> to vector<16xf32>
    %7 = vector.shape_cast %6 : vector<16xf32> to vector<16x1xf32>
    %8 = vector.broadcast %7 : vector<16x1xf32> to vector<16x64xf32>
    %9 = arith.subf %5, %8 : vector<16x64xf32>
    %10 = math.exp %9 : vector<16x64xf32>
    %cst_6 = arith.constant dense<0.000000e+00> : vector<16xf32>
    %11 = vector.multi_reduction <add>, %10, %cst_6 [1] : vector<16x64xf32> to vector<16xf32>
    %12 = vector.shape_cast %11 : vector<16xf32> to vector<16x1xf32>
    %13 = math.log %12 : vector<16x1xf32>
    %14 = arith.addf %7, %13 : vector<16x1xf32>
    %15 = vector.broadcast %14 : vector<16x1xf32> to vector<16x64xf32>
    %16 = arith.subf %5, %15 : vector<16x64xf32>
    %c0_7 = arith.constant 0 : index
    %c0_8 = arith.constant 0 : index
    %17 = vector.load %arg4[%c0_7, %c0_8] : memref<16x64xf32, #tpu.memory_space<vmem>>, vector<16x64xf32>
    tpu.vector_store %arg4[%c0_7, %c0_8], %16 {strides = array<i32>} : memref<16x64xf32, #tpu.memory_space<vmem>>, vector<16x64xf32>,
    return
  }
  func.func @transform_0(%arg0: i32) -> (i32, i32) {
    %c0_i32 = arith.constant 0 : i32
    %c0_i32_0 = arith.constant 0 : i32
    return %arg0, %c0_i32 : i32, i32
  }
  func.func @transform_1(%arg0: i32) -> (i32, i32) {
    %c0_i32 = arith.constant 0 : i32
    %c0_i32_0 = arith.constant 0 : i32
    %c0_i32_1 = arith.constant 0 : i32
    return %c0_i32, %c0_i32_0 : i32, i32
  }
  func.func @transform_2(%arg0: i32) -> (i32, i32) {
    %c0_i32 = arith.constant 0 : i32
    %c0_i32_0 = arith.constant 0 : i32
    %c0_i32_1 = arith.constant 0 : i32
    return %c0_i32, %c0_i32_0 : i32, i32
  }
  func.func @transform_3(%arg0: i32) -> (i32, i32) {
    %c0_i32 = arith.constant 0 : i32
    %c0_i32_0 = arith.constant 0 : i32
    return %arg0, %c0_i32 : i32, i32
  }
}

</mosaic_0001>

<bundles_post_ra>
// kernel: tpu_custom_call.1
= control target key start
LH: loop header
LB: loop body
LE: loop exit
PB: predicated region body
PF: predicated region fallthrough
CT: control target
= control target key end

     0   :  { %8 = vsyncpa [#allocation3], 0  ;;  %s338_s0 = inlined_call_operand.hbm [shape: f32[16,32], index: 0, kind: input, shape index: {}]   ;;  %s339_s1 = inlined_call_operand.hbm [shape: f32[32,64], index: 1, kind: input, shape index: {}]   ;;  %s340_s2 = inlined_call_operand.vmem [shape: f32[1,64], index: 2, kind: input, shape index: {}]   ;;  %s341_s3 = inlined_call_operand.hbm [shape: f32[16,64], index: 3, kind: output, shape index: {}]  }
   0x1   :  { %9 = vsyncpa [#allocation6], 0 }
   0x2   :  { %10 = vsyncpa [#allocation4], 0  ;;  %s284_s12 = smov [#allocation2]  }
   0x3   :  { %s16_s13 = sshll.u32 %s284_s12, 4  ;;  %s17_s13 = int_to_ptr.vmem [resolvable:$true] %s16_s13 }
   0x4   :  { %s226_s14 = scalar_lea.vmem %s17_s13, 256  ;;  %p231_p1 = scmp.lt.s32.totalorder %s17_s13, %s17_s13 }
   0x5   :  { %p227_p0 = scmp.ne.s32.totalorder %s17_s13, %s226_s14  ;;  %p232_p2 = scmp.lt.s32.totalorder %s226_s14, %s226_s14 }
   0x7   :  { %p233_p3 = por %p232_p2, %p231_p1 }
   0x9   :  { %p234_p4 = pnand %p233_p3, %p227_p0 }
   0xb   :  { %237 = shalt.err (!%p234_p4)
}
   0xc   :  { %s285_s15 = smov 128   ;;  %s286_s16 = smov 8  }
   0xd   :  { %22 = dma.hbm_to_vmem [thread:$0]  %s338_s0, 256, %s17_s13, [#allocation3], %s285_s15, %s285_s15, %s286_s16  }
   0xe   :  { %s287_s19 = smov [#allocation5]  }
   0xf   :  { %s28_s20 = sshll.u32 %s287_s19, 4  ;;  %s29_s20 = int_to_ptr.vmem [resolvable:$true] %s28_s20 }
  0x10   :  { %s246_s21 = scalar_lea.vmem %s29_s20, 512  ;;  %p251_p6 = scmp.lt.s32.totalorder %s29_s20, %s29_s20 }
  0x11   :  { %p247_p5 = scmp.ne.s32.totalorder %s29_s20, %s246_s21  ;;  %p252_p7 = scmp.lt.s32.totalorder %s246_s21, %s246_s21 }
  0x13   :  { %p253_p8 = por %p252_p7, %p251_p6 }
  0x15   :  { %p254_p9 = pnand %p253_p8, %p247_p5 }
  0x17   :  { %257 = shalt.err (!%p254_p9)
}
  0x18   :  { %34 = dma.hbm_to_vmem [thread:$0]  %s339_s1, 512, %s29_s20, [#allocation6], %s285_s15, %s285_s15, %s286_s16  }
  0x19   :  { %278 = dma.done.wait [#allocation3], 256  }
  0x1a   :  { %279 = vsyncadd [#allocation3], 4294967040 }
  0x1b   :  { %280 = dma.done.wait [#allocation6], 512  }
  0x1c   :  { %281 = vsyncadd [#allocation6], 4294966784  ;;  %vm56_vm0 = vcmask 261120   ;;  %v48_v0 = vld [vmem:[#allocation5 + $0x18] sm:$0xff]  ;;  %v47_v1 = vld [vmem:[#allocation5 + $0x10] sm:$0xff]  ;;  %vm138_vm1 = vcmask 523264  }
  0x1d   :  { %194 = vmatprep.subr.mxu0 %v48_v0  ;;  %v43_v2 = vld [vmem:[#allocation2] sm:$0xff]  ;;  %v46_v3 = vld [vmem:[#allocation5 + $0x8] sm:$0xff]  ;;  %v45_v4 = vld [vmem:[#allocation5] sm:$0xff] }
  0x1e   :  { %195 = vmatpush3.msra.mxu0 %v48_v0  ;;  %202 = vmatprep.mubr.msk.f32.mxu0 %vm56_vm0, %v43_v2  ;;  %v44_v5 = vld [vmem:[#allocation2 + $0x8] sm:$0xff]  ;;  %v185_v7 = vld [vmem:[%s340_s2] ss:$0 sm:$0xff]  ;;  %s288_s2 = smov [#allocation7]  }
  0x1f   :  { %196 = vmatprep.subr.mxu0 %v47_v1  ;;  %s172_s24 = sshll.u32 %s288_s2, 4  ;;  %s173_s24 = int_to_ptr.vmem [resolvable:$true] %s172_s24 }
  0x20   :  { %197 = vmatpush3.msra.mxu0 %v47_v1  ;;  %s258_s25 = scalar_lea.vmem %s173_s24, 256  ;;  %p263_p11 = scmp.lt.s32.totalorder %s173_s24, %s173_s24 }
  0x21   :  { %198 = vmatprep.subr.mxu0 %v46_v3  ;;  %p259_p10 = scmp.ne.s32.totalorder %s173_s24, %s258_s25  ;;  %p264_p12 = scmp.lt.s32.totalorder %s258_s25, %s258_s25 }
  0x22   :  { %199 = vmatpush3.msra.mxu0 %v46_v3 }
  0x23   :  { %200 = vmatprep.subr.mxu0 %v45_v4  ;;  %p265_p13 = por %p264_p12, %p263_p11 }
  0x24   :  { %201 = vmatpush3.msra.mxu0 %v45_v4 }
  0x25   :  { %203 = vmatmul.mubr.msk.f32.vlgmr.msra.gmra.mxu0 %vm56_vm0, %v44_v5  ;;  %p266_p0 = pnand %p265_p13, %p259_p10 }
  0xe5   :  { %v204_v6 = vpop.f32.mrf.mxu0 }
  0xe6   :  { %v135_v10 = vadd.f32 %v204_v6, %v185_v7 }
  0xe7   :  { %v129_v8 = vpop.f32.mrf.mxu0 }
  0xe8   :  { %v130_v9 = vadd.f32 %v185_v7, %v129_v8  ;;  %v142_v12 = vsel %vm138_vm1, %v135_v10, -inf }
  0xea   :  { %v139_v11 = vsel %vm138_vm1, %v130_v9, -inf }
  0xeb   :  { %140 = vmax.xlane.f32.xlu0 %v139_v11 }
  0xef   :  { %143 = vmax.xlane.f32.xlu0 %v142_v12 }
 0x174   :  { %v141_v13 = vpop.xlane.xlu0 %140 }
 0x175   :  { %v145_v14 = vsub.f32 %v130_v9, %v141_v13 }
 0x177   :  { %v147_v15 = vmul.f32 1.442695, %v145_v14 }
 0x178   :  { %v144_v16 = vpop.xlane.xlu0 %143 }
 0x179   :  { %210 = vpow2.f32 %v147_v15  ;;  %v146_v17 = vsub.f32 %v135_v10, %v144_v16 }
 0x17b   :  { %v149_v18 = vmul.f32 1.442695, %v146_v17 }
 0x17d   :  { %212 = vpow2.f32 %v149_v18 }
 0x186   :  { %v211_v19 = vpop.eup %210 }
 0x187   :  { %v151_v20 = vsel %vm138_vm1, %v211_v19, 0.0 }
 0x188   :  { %152 = vadd.xlane.f32.xlu1 %v151_v20 }
 0x18a   :  { %v213_v21 = vpop.eup %212 }
 0x18b   :  { %v154_v22 = vsel %vm138_vm1, %v213_v21, 0.0 }
 0x18c   :  { %155 = vadd.xlane.f32.xlu1 %v154_v22 }
 0x211   :  { %v153_v23 = vpop.xlane.xlu1 %152 }
 0x212   :  { %214 = vlog2.f32 %v153_v23 }
 0x215   :  { %v156_v24 = vpop.xlane.xlu1 %155 }
 0x216   :  { %216 = vlog2.f32 %v156_v24 }
 0x21f   :  { %v215_v25 = vpop.eup %214 }
 0x220   :  { %v158_v26 = vmul.f32 0.6931472, %v215_v25 }
 0x222   :  { %v161_v27 = vadd.f32 %v158_v26, %v141_v13 }
 0x223   :  { %v217_v28 = vpop.eup %216 }
 0x224   :  { %v160_v29 = vmul.f32 0.6931472, %v217_v28  ;;  %v163_v30 = vsub.f32 %v130_v9, %v161_v27 }
 0x226   :  { %v162_v31 = vadd.f32 %v160_v29, %v144_v16  ;;  %165 = vst.msk [vmem:[#allocation7] sm:$0xff] %vm138_vm1, %v163_v30 }
 0x228   :  { %v164_v32 = vsub.f32 %v135_v10, %v162_v31 }
 0x22a   :  { %166 = vst.msk [vmem:[#allocation7 + $0x8] sm:$0xff] %vm138_vm1, %v164_v32 }
 0x22b   :  { %269 = shalt.err (!%p266_p0)
}
 0x22c   :  { %178 = dma.vmem_to_hbm [thread:$0]  %s173_s24, 256, %s341_s3, [#allocation4], %s285_s15, %s285_s15, %s286_s16  }
 0x22d   :  { %282 = dma.done.wait [#allocation4], 256  }
 0x22e   :  { %283 = vsyncadd [#allocation4], 4294967040 }
 0x22f   :  { %182 = vsyncpa [#allocation3], 1 }
 0x230   :  { %183 = vsyncpa [#allocation6], 1 }
 0x231   :  { %184 = vsyncpa [#allocation4], 1 }

</bundles_post_ra>
